<compile_context>
chip_gen: v7x
topology: tpu7x:2x2x1
jax: 0.10.0
libtpu: 0.0.40
codegen_flags: <defaults>
</compile_context>

<pallas_src>
import math

import jax
import jax.numpy as jnp
from jax.experimental import pallas as pl
from jax.experimental.pallas import tpu as pltpu


def _round_up(a: int, b: int) -> int:
    return ((a + b - 1) // b) * b


# ---------------------------------------------------------------------------
# Matmul kernels (P1 + P3: accumulator carried across the K grid axis)
# ---------------------------------------------------------------------------
def _matmul_kernel_accum_out(x_ref, w_ref, o_ref):
    """f32 output: accumulate directly in the VMEM-resident output block."""
    @pl.when(pl.program_id(2) == 0)
    def _init():
        o_ref[...] = jnp.zeros_like(o_ref)

    o_ref[...] += jnp.dot(x_ref[...], w_ref[...],
                          preferred_element_type=jnp.float32)


def _matmul_kernel_scratch(x_ref, w_ref, o_ref, acc_ref):
    """Non-f32 output: f32 VMEM scratch accumulator, cast on the last K step."""
    @pl.when(pl.program_id(2) == 0)
    def _init():
        acc_ref[...] = jnp.zeros_like(acc_ref)

    acc_ref[...] += jnp.dot(x_ref[...], w_ref[...],
                            preferred_element_type=jnp.float32)

    @pl.when(pl.program_id(2) == pl.num_programs(2) - 1)
    def _store():
        o_ref[...] = acc_ref[...].astype(o_ref.dtype)


# ---------------------------------------------------------------------------
# Wrapper
# ---------------------------------------------------------------------------
def pallas_matmul(x: jax.Array, w: jax.Array, *, out_dtype=None,
                  tm: int = 512, tn: int = 512, tk: int = 1024,
                  force_pallas: bool = False,
                  vmem_limit_bytes: int = 48 * 1024 * 1024) -> jax.Array:
    """y = x @ w with a tiled, f32-accumulating Pallas TPU matmul."""
    M, K = x.shape
    K2, N = w.shape
    assert K == K2, "inner dims must match"
    out_dtype = jnp.dtype(out_dtype if out_dtype is not None else x.dtype)

    # Tiny problems: pallas_call + MXU fill/drain overhead dominates and a
    # (1,1,1) grid has no pipelining; let XLA handle it.
    if not force_pallas and (M < 8 or N < 128 or K < 128
                             or 2 * M * N * K < (1 << 22)):
        return jnp.dot(x, w, preferred_element_type=jnp.float32).astype(out_dtype)

    # --- Tile selection ------------------------------------------------------
    # Full extent when the dim fits the preferred tile (always a legal block),
    # otherwise an (8,128)-aligned tile with a cdiv grid; ragged M/N edge
    # blocks are masked on the output write so garbage reads are harmless.
    tm = M if M <= tm else tm          # tm preset is 8-aligned (in fact 128/256)
    tn = N if N <= tn else tn          # tn preset is 128-aligned

    # K must be fully covered by real data (out-of-bounds K would pollute the
    # accumulator), so zero-pad K to a multiple of tk if it is ragged.
    if K <= tk:
        tk = K
    else:
        kp = _round_up(K, tk)
        if kp != K:
            x = jnp.pad(x, ((0, 0), (0, kp - K)))
            w = jnp.pad(w, ((0, kp - K), (0, 0)))
            K = kp

    grid_m, grid_n, grid_k = pl.cdiv(M, tm), pl.cdiv(N, tn), pl.cdiv(K, tk)

    # v7x has 2 TensorCores sharded over the "parallel" axes: make sure the
    # parallel (M, N) grid has at least 2 points.
    if grid_m * grid_n == 1:
        if N >= 256:
            tn = _round_up(pl.cdiv(N, 2), 128)
            grid_n = pl.cdiv(N, tn)
        elif M >= 16:
            tm = _round_up(pl.cdiv(M, 2), 8)
            grid_m = pl.cdiv(M, tm)

    cost = pl.CostEstimate(
        flops=2 * M * N * K,
        transcendentals=0,
        bytes_accessed=(x.dtype.itemsize * M * K
                        + w.dtype.itemsize * K * N
                        + out_dtype.itemsize * M * N),
    )

    accum_in_out = out_dtype == jnp.float32
    kernel = _matmul_kernel_accum_out if accum_in_out else _matmul_kernel_scratch
    scratch = [] if accum_in_out else [pltpu.VMEM((tm, tn), jnp.float32)]

    return pl.pallas_call(
        kernel,
        out_shape=jax.ShapeDtypeStruct((M, N), out_dtype),
        grid_spec=pltpu.PrefetchScalarGridSpec(
            num_scalar_prefetch=0,
            grid=(grid_m, grid_n, grid_k),
            in_specs=[
                pl.BlockSpec((tm, tk), lambda i, j, k: (i, k)),
                pl.BlockSpec((tk, tn), lambda i, j, k: (k, j)),
            ],
            out_specs=pl.BlockSpec((tm, tn), lambda i, j, k: (i, j)),
            scratch_shapes=scratch,
        ),
        compiler_params=pltpu.CompilerParams(
            dimension_semantics=("parallel", "parallel", "arbitrary"),
            vmem_limit_bytes=vmem_limit_bytes,
        ),
        cost_estimate=cost,
    )(x, w)


# ---------------------------------------------------------------------------
# PhaseShifter module (JAX wrapper matching the PyTorch forward semantics)
# ---------------------------------------------------------------------------
class PhaseShifter:
    """y = x @ cat([[cos(th)/s, -sin(th)/s], [sin(th)/s, cos(th)/s]])."""

    def __init__(self, in_features: int, out_features: int, scale: float = 1.0,
                 theta: jax.Array | None = None, *, key: jax.Array | None = None,
                 compute_dtype=None):
        assert in_features % 2 == 0, "in_features must be even"
        self.in_features = in_features
        self.in_dim = in_features // 2
        self.out_features = out_features
        self.scale = float(scale)
        self.compute_dtype = compute_dtype  # e.g. jnp.bfloat16 for MXU-native rate
        if theta is None:
            assert key is not None, "need a PRNG key when theta is not given"
            theta = jax.random.uniform(
                key, (self.in_dim, out_features),
                minval=0.0, maxval=2.0 * math.pi, dtype=jnp.float32)
        else:
            assert theta.shape == (self.in_dim, out_features)
        self.theta = theta
        # Weight is a fixed function of theta: build it once instead of
        # re-materializing a 4x-theta-sized array in HBM every call.
        # (Building the [[R,-I],[I,R]] tile from theta inside the kernel would
        # stream 1/4 of the bytes; cos/sin would ride the idle EUP slot.)
        self._weight = self.complex_weight()
        if self.compute_dtype is not None:
            self._weight = self._weight.astype(self.compute_dtype)

    def complex_weight(self) -> jax.Array:
        """(in_features, 2*out_features) real-valued block weight matrix."""
        real_k = jnp.cos(self.theta) / self.scale
        imag_k = jnp.sin(self.theta) / self.scale
        w_real = jnp.concatenate([real_k, -imag_k], axis=-1)
        w_imag = jnp.concatenate([imag_k, real_k], axis=-1)
        return jnp.concatenate([w_real, w_imag], axis=0)

    def __call__(self, x: jax.Array) -> jax.Array:
        out_dtype = x.dtype
        lead = x.shape[:-1]
        x2 = x.reshape(-1, self.in_features)
        if self.compute_dtype is not None:
            x2 = x2.astype(self.compute_dtype)
        y = pallas_matmul(x2, self._weight, out_dtype=out_dtype)
        return y.reshape(*lead, 2 * self.out_features)


# ---------------------------------------------------------------------------
# Demo / correctness check
# ---------------------------------------------------------------------------
if __name__ == "__main__":
    key = jax.random.PRNGKey(0)
    k_theta, k_x, k_xs = jax.random.split(key, 3)

    batch = 256
    in_features = 256    # -> in_dim = 128, K = 256
    out_features = 128   # -> output last dim = 256 (lane-dense)
    scale = 2.0

    m = PhaseShifter(in_features, out_features, scale=scale, key=k_theta)

    # Shape large enough to go through the Pallas path.
    x = jax.random.normal(k_x, (batch, in_features), dtype=jnp.float32)
    out = jax.block_until_ready(m(x))

    w_ref = m.complex_weight()
    ref = jnp.matmul(x, w_ref, precision=jax.lax.Precision.HIGHEST)
    assert out.shape == (batch, 2 * out_features)
    assert out.dtype == x.dtype
    assert jnp.allclose(out, ref, atol=1e-3, rtol=1e-3)

    # Tiny-batch call exercises the small-problem fallback (plain jnp.dot).
    x_small = jax.random.normal(k_xs, (4, in_features), dtype=jnp.float32)
    out_small = jax.block_until_ready(m(x_small))
    ref_small = jnp.matmul(x_small, w_ref, precision=jax.lax.Precision.HIGHEST)
    assert jnp.allclose(out_small, ref_small, atol=1e-3, rtol=1e-3)

    print("KERNEL_OK")
</pallas_src>

<mosaic_0001>
module attributes {stable_mosaic.version = 11 : i64} {
  func.func @_matmul_kernel_accum_out(%arg0: i32, %arg1: i32, %arg2: i32, %arg3: memref<256x256xf32, #tpu.memory_space<vmem>>, %arg4: memref<256x128xf32, #tpu.memory_space<vmem>>, %arg5: memref<256x128xf32, #tpu.memory_space<vmem>>) attributes {dimension_semantics = [#tpu.dimension_semantics<parallel>, #tpu.dimension_semantics<parallel>, #tpu.dimension_semantics<arbitrary>], iteration_bounds = array<i64: 1, 2, 1>, scalar_prefetch = 0 : i64, scratch_operands = 0 : i64, tpu.core_type = #tpu.core_type<tc>, window_params = [{transform_indices = @transform_0, window_bounds = array<i64: 256, 256>}, {transform_indices = @transform_1, window_bounds = array<i64: 256, 128>}, {transform_indices = @transform_2, window_bounds = array<i64: 256, 128>}]} {
    %c0_i32 = arith.constant 0 : i32
    %0 = arith.cmpi eq, %arg2, %c0_i32 : i32
    %1 = arith.extui %0 : i1 to i32
    %c0_i32_0 = arith.constant 0 : i32
    %2 = arith.cmpi ne, %1, %c0_i32_0 : i32
    scf.if %2 {
      %cst_8 = arith.constant 0.000000e+00 : f32
      %9 = vector.broadcast %cst_8 : f32 to vector<256x128xf32>
      %c0_9 = arith.constant 0 : index
      %c0_10 = arith.constant 0 : index
      %10 = vector.load %arg5[%c0_9, %c0_10] : memref<256x128xf32, #tpu.memory_space<vmem>>, vector<256x128xf32>
      tpu.vector_store %arg5[%c0_9, %c0_10], %9 {strides = array<i32>} : memref<256x128xf32, #tpu.memory_space<vmem>>, vector<256x128xf32>,
    } else {
    }
    %c0 = arith.constant 0 : index
    %c0_1 = arith.constant 0 : index
    %3 = vector.load %arg5[%c0, %c0_1] : memref<256x128xf32, #tpu.memory_space<vmem>>, vector<256x128xf32>
    %c0_2 = arith.constant 0 : index
    %c0_3 = arith.constant 0 : index
    %4 = vector.load %arg3[%c0_2, %c0_3] : memref<256x256xf32, #tpu.memory_space<vmem>>, vector<256x256xf32>
    %c0_4 = arith.constant 0 : index
    %c0_5 = arith.constant 0 : index
    %5 = vector.load %arg4[%c0_4, %c0_5] : memref<256x128xf32, #tpu.memory_space<vmem>>, vector<256x128xf32>
    %cst = arith.constant dense<0.000000e+00> : vector<256x128xf32>
    %6 = tpu.matmul %4, %5, %cst {dimension_numbers = #tpu.dot_dimension_numbers<[1], [0], [0], [1], [0, 0, 1, 1], [], []>} : vector<256x256xf32>, vector<256x128xf32>, vector<256x128xf32> -> vector<256x128xf32>
    %7 = arith.addf %3, %6 : vector<256x128xf32>
    %c0_6 = arith.constant 0 : index
    %c0_7 = arith.constant 0 : index
    %8 = vector.load %arg5[%c0_6, %c0_7] : memref<256x128xf32, #tpu.memory_space<vmem>>, vector<256x128xf32>
    tpu.vector_store %arg5[%c0_6, %c0_7], %7 {strides = array<i32>} : memref<256x128xf32, #tpu.memory_space<vmem>>, vector<256x128xf32>,
    return
  }
  func.func @transform_0(%arg0: i32, %arg1: i32, %arg2: i32) -> (i32, i32) {
    %c0_i32 = arith.constant 0 : i32
    return %arg0, %arg2 : i32, i32
  }
  func.func @transform_1(%arg0: i32, %arg1: i32, %arg2: i32) -> (i32, i32) {
    %c0_i32 = arith.constant 0 : i32
    return %arg2, %arg1 : i32, i32
  }
  func.func @transform_2(%arg0: i32, %arg1: i32, %arg2: i32) -> (i32, i32) {
    %c0_i32 = arith.constant 0 : i32
    return %arg0, %arg1 : i32, i32
  }
}

</mosaic_0001>

<bundles_post_ra>
// kernel: tpu_custom_call.1
= control target key start
LH: loop header
LB: loop body
LE: loop exit
PB: predicated region body
PF: predicated region fallthrough
CT: control target
= control target key end

     0   :  { %7 = vsyncpa [#allocation3], 0  ;;  %s1470_s0 = inlined_call_operand.hbm [shape: f32[256,256], index: 0, kind: input, shape index: {}]   ;;  %s1471_s1 = inlined_call_operand.hbm [shape: f32[256,256], index: 1, kind: input, shape index: {}]   ;;  %s1472_s2 = inlined_call_operand.hbm [shape: f32[256,256], index: 2, kind: output, shape index: {}]  }
   0x1   :  { %8 = vsyncpa [#allocation6], 0 }
   0x2   :  { %10 = vsyncpa [#allocation6 + $0x1], 0 }
   0x3   :  { %11 = vsyncpa [#allocation4], 0 }
   0x4   :  { %13 = vsyncpa [#allocation4 + $0x1], 0  ;;  %s1142_s9 = smov 0   ;;  %s1144_s10 = smov 0  }
   0x5   :  { %s1146_s11 = smov 0   ;;  %s1148_s12 = smov 0  }
   0x6   :  { %s1150_s13 = smov 0   ;;  %s1152_s14 = smov 0  }
   0x7 LB: > { %s793_s15 = sadd.s32 4294967295, %s1114_s14   ;;  %s794_s16 = sadd.s32 4294967294, %s1114_s14   ;;  %s1114_s14 = sphi %s1152_s14, %s19_s14   ;;  %s1110_s13 = sphi %s1150_s13, %s1498_s13   ;;  %s1106_s12 = sphi %s1148_s12, %s1497_s12   ;;  %s1102_s11 = sphi %s1146_s11, %s1496_s11   ;;  %s1098_s10 = sphi %s1144_s10, %s1495_s10   ;;  %s1094_s9 = sphi %s1142_s9, %s1494_s9  }
   0x8   : > { %p82_p0 = scmp.ne.s32.totalorder %s1102_s11, %s1098_s10  ;;  %p83_p1 = scmp.eq.s32.totalorder %s1114_s14, 0 }
   0x9   : > { %p88_p2 = scmp.ne.s32.totalorder %s1098_s10, %s1094_s9  ;;  %p1179_p3 = scmp.eq.s32.totalorder %s793_s15, 0 }
   0xa   : > { %p1183_p4 = por %p83_p1, %p82_p0  ;;  %p114_p5 = scmp.eq.s32.totalorder %s793_s15, 1 }
   0xb   : > { %s1479_s17 = scalar_select %p1179_p3, 1, 0 }
   0xc   : > { %p1189_p6 = por %p1179_p3, %p88_p2  ;;  %p120_p7 = scmp.eq.s32.totalorder %s794_s16, 1 }
   0xd   : > { %p1193_p8 = por %p114_p5, %p82_p0  ;;  %p795_p9 = scmp.ge.s32.totalorder %s1114_s14, 1 }
   0xe   : > { %s1481_s19 = scalar_select %p1189_p6, 1, 0 }
   0xf   : > { %s1482_s20 = scalar_select %p1193_p8, 1, 0 }
  0x10   : > { %p1198_p10 = por %p120_p7, %p88_p2  ;;  %p127_p11 = scmp.lt.s32.totalorder %s1114_s14, 3 }
  0x11   : > { %s1116_s23 = smov [#allocation2]   ;;  %p909_p1 = scmp.lt.s32.totalorder %s1114_s14, 2 }
  0x12   : > { %s1483_s21 = scalar_select %p1198_p10, 1, 0 }
  0x13   : > { %p1203_p12 = pnand %p795_p9, %p127_p11  ;;  %s145_s24 = sshll.u32 %s1116_s23, 4  ;;  %s1207_s24 = int_to_ptr.vmem [resolvable:$true] %s145_s24 }
  0x14   : > { %p1221_p2 = pnand %p909_p1, %p1183_p4  ;;  %s34_s27 = sadd.s32 1, %s1110_s13 }
  0x15   : > { %s1484_s22 = scalar_select %p1203_p12, 1, 0 }
  0x16   : > { %p896_p13 = pneg %p1203_p12  ;;  %s970_s30 = scalar_lea.hbm %s1470_s0, 8192 }
  0x17   : > { %s1486_s26 = scalar_select %p1221_p2, 1, 0 }
  0x18   : > { %p1215_p5 = pnand %p896_p13, %p1179_p3  ;;  %p971_p7 = scmp.ne.s32.totalorder %s1470_s0, %s970_s30 }
  0x19   : > { %p977_p4 = scmp.lt.u32.totalorder %s970_s30, %s1470_s0 }
  0x1a   : > { %p972_p9 = pneg %p1215_p5 }
  0x1c   : > { %p973_p11 = pnand %p972_p9, %p971_p7 }
  0x1e   : > { %p974_p13 = pneg %p973_p11 }
  0x20   : > { %p979_p1 = pnand %p977_p4, %p974_p13 }
  0x22   : > { %982 = shalt.err (!%p979_p1)
}
  0x23   : > { %s983_s7 = scalar_lea.vmem %s1207_s24, 8192  ;;  %p991_p6 = scmp.lt.s32.totalorder %s1207_s24, %s1207_s24 }
  0x24   : > { %p984_p0 = scmp.ne.s32.totalorder %s1207_s24, %s983_s7  ;;  %p992_p3 = scmp.lt.s32.totalorder %s983_s7, %s983_s7 }
  0x26   : > { %p986_p10 = pnand %p984_p0, %p972_p9  ;;  %p993_p12 = por %p992_p3, %p991_p6 }
  0x28   : > { %p987_p8 = pneg %p986_p10 }
  0x2a   : > { %p994_p2 = pnand %p993_p12, %p987_p8 }
  0x2c   : > { %997 = shalt.err (!%p994_p2)
}
  0x2d   : > { %s1117_s8 = smov 256   ;;  %s1118_s15 = smov 16  }
  0x2e   : > { %899 = dma.hbm_to_vmem [thread:$0]  (!%p1215_p5), %s1470_s0, 8192, %s1207_s24, [#allocation3], %s1117_s8, %s1117_s8, %s1118_s15  }
  0x2f   : > { %p36_p10 = scmp.ge.s32.totalorder %s34_s27, 2  ;;  %s75_s23 = sadd.s32 1, %s1102_s11 }
  0x30   : > { %s159_s28 = sand.u32 1, %s1102_s11   ;;  %s799_s3 = sshll.u32 %s1110_s13, 7 }
  0x31   : > { %s1500_s27 = smov (%p36_p10, %s34_s27), 0  ;;  %s798_s29 = sshll.u32 %s159_s28, 8 }
  0x32   : > { %s71_s30 = ssub.s32 %s1110_s13, %s1500_s27  ;;  %s1259_s5 = scalar_lea.hbm %s1471_s1, %s799_s3 }
  0x33   : > { %p73_p3 = scmp.eq.s32.totalorder %s71_s30, 0  ;;  %s163_s24 = scalar_lea.vmem [#allocation5], %s798_s29 }
  0x34   : > { %s172_s6 = sshll.u32 %s163_s24, 4  ;;  %s1266_s15 = scalar_lea.sflag [#allocation6], %s159_s28  ;;  %s1264_s6 = int_to_ptr.vmem [resolvable:$true] %s172_s6 }
  0x35   : > { %s1262_s7 = scalar_select %p73_p3, %s1102_s11, %s75_s23  }
  0x36   : > { %s998_s16 = scalar_lea.hbm %s1259_s5, 4096  ;;  %p1487_p8 = scmp.ne.s32.totalorder %s1486_s26, 0 }
  0x37   : > { %p999_p6 = scmp.ne.s32.totalorder %s1259_s5, %s998_s16  ;;  %s1003_s3 = scalar_lea.hbm %s1471_s1, 8192 }
  0x38   : > { %p1000_p12 = pneg %p1487_p8  ;;  %p1004_p2 = scmp.lt.u32.totalorder %s1259_s5, %s1471_s1 }
  0x39   : > { %p1005_p7 = scmp.lt.u32.totalorder %s1003_s3, %s998_s16  ;;  %p1007_p11 = scmp.lt.u32.totalorder %s998_s16, %s1259_s5 }
  0x3a   : > { %p1001_p0 = pnand %p1000_p12, %p999_p6 }
  0x3b   : > { %p1006_p9 = por %p1005_p7, %p1004_p2 }
  0x3c   : > { %p1002_p5 = pneg %p1001_p0 }
  0x3d   : > { %p1008_p13 = por %p1007_p11, %p1006_p9 }
  0x3f   : > { %p1009_p4 = pnand %p1008_p13, %p1002_p5 }
  0x41   : > { %1012 = shalt.err (!%p1009_p4)
}
  0x42   : > { %s1013_s23 = scalar_lea.vmem %s1264_s6, 4096  ;;  %s1119_s28 = smov [#allocation5]  }
  0x43   : > { %p1014_p1 = scmp.ne.s32.totalorder %s1264_s6, %s1013_s23  ;;  %s1018_s25 = sshll.u32 %s1119_s28, 4  ;;  %s1019_s25 = int_to_ptr.vmem [resolvable:$false] %s1018_s25 }
  0x44   : > { %s1020_s24 = scalar_lea.vmem %s1019_s25, 8192  ;;  %p1021_p6 = scmp.lt.s32.totalorder %s1264_s6, %s1019_s25 }
  0x45   : > { %p1016_p10 = pnand %p1014_p1, %p1000_p12  ;;  %p1022_p0 = scmp.lt.s32.totalorder %s1020_s24, %s1013_s23 }
  0x47   : > { %p1017_p3 = pneg %p1016_p10  ;;  %p1023_p2 = por %p1022_p0, %p1021_p6 }
  0x49   : > { %p1024_p7 = pnand %p1023_p2, %p1017_p3 }
  0x4b   : > { %1027 = shalt.err (!%p1024_p7)
}
  0x4c   : > { %s1120_s16 = smov 128   ;;  %s1121_s18 = smov 8  }
  0x4d   : > { %903 = dma.hbm_to_vmem [thread:$0]  (!%p1487_p8), %s1259_s5, 4096, %s1264_s6, %s1266_s15, %s1117_s8, %s1120_s16, %s1121_s18  }
  0x4e   : > { %p1488_p12 = scmp.ne.s32.totalorder %s1484_s22, 0 }
  0x4f   : > { %p1489_p5 = scmp.ne.s32.totalorder (!%p1488_p12), %s1479_s17, 0 }
  0x50   : > { %184 = sbr.rel (%p1488_p12) target bundleno = 446 (0x1be), region = 28 }
  0x57   : > { %1081 = dma.done.wait (%p1489_p5), [#allocation3], 8192  }
  0x58   : > { %1083 = vsyncadd (%p1489_p5), [#allocation3], 4294959104  ;;  %s1302_s30 = sand.u32 1, %s1098_s10   ;;  %p1490_p8 = scmp.ne.s32.totalorder %s1481_s19, 0 }
  0x59   : > { %s802_s3 = sshll.u32 %s1302_s30, 8  ;;  %s191_s26 = scalar_lea.sflag [#allocation6], %s1302_s30 }
  0x5a   : > { %s1308_s8 = scalar_lea.vmem [#allocation5], %s802_s3 }
  0x5b   : > { %1085 = dma.done.wait (%p1490_p8), %s191_s26, 4096  }
  0x5c   : > { %1087 = vsyncadd (%p1490_p8), %s191_s26, 4294963200  ;;  %v1122_v0 = vmov 0.0|0.0   ;;  %v351_v1 = vld [vmem:[%s1308_s8] sm:$0xff]  ;;  %v352_v2 = vld [vmem:[%s1308_s8 + $0x8] sm:$0xff]  ;;  %s1380_s17 = scalar_lea.vmem [#allocation7], %s802_s3  ;;  %s805_s19 = sshll.u32 %s1106_s12, 7 }
  0x5d   : > { %808 = vmatprep.subr.bf16.mxu0 %v1122_v0  ;;  %856 = vmatprep.subr.bf16.mxu1 %v1122_v0  ;;  %v353_v3 = vld [vmem:[%s1308_s8 + $0x10] sm:$0xff]  ;;  %v809_v4 = vpack.c.bf16 %v352_v2, %v351_v1  ;;  %v354_v5 = vld [vmem:[%s1308_s8 + $0x18] sm:$0xff]  ;;  %v355_v7 = vld [vmem:[%s1308_s8 + $0x20] sm:$0xff]  ;;  %s688_s22 = sshll.u32 %s1380_s17, 4  ;;  %s1417_s15 = scalar_lea.hbm %s1472_s2, %s805_s19  ;;  %s1419_s22 = int_to_ptr.vmem [resolvable:$true] %s688_s22 }
  0x5e   : > { %v812_v6 = vpack.c.bf16 %v354_v5, %v353_v3  ;;  %v356_v8 = vld [vmem:[%s1308_s8 + $0x28] sm:$0xff]  ;;  %v357_v10 = vld [vmem:[%s1308_s8 + $0x30] sm:$0xff]  ;;  %v358_v11 = vld [vmem:[%s1308_s8 + $0x38] sm:$0xff]  ;;  %s673_s12 = scalar_lea.sflag [#allocation4], %s1302_s30  ;;  %s1028_s29 = scalar_lea.vmem %s1419_s22, 4096 }
  0x5f   : > { %810 = vmatpush1.bf16.msra.mxu0 %v809_v4  ;;  %872 = vmatpush1.bf16.msra.mxu1 %v809_v4  ;;  %v815_v9 = vpack.c.bf16 %v356_v8, %v355_v7  ;;  %v288_v12 = vld [vmem:[#allocation2 + $0x8] sm:$0xff]  ;;  %v818_v13 = vpack.c.bf16 %v358_v11, %v357_v10  ;;  %v359_v15 = vld [vmem:[%s1308_s8 + $0x40] sm:$0xff]  ;;  %v361_v18 = vld [vmem:[%s1308_s8 + $0x50] sm:$0xff]  ;;  %p1029_p9 = scmp.ne.s32.totalorder %s1419_s22, %s1028_s29  ;;  %p1491_p11 = scmp.ne.s32.totalorder %s1482_s20, 0 }
  0x60   : > { %811 = vmatprep.subr.bf16.mxu0 %v1122_v0  ;;  %857 = vmatprep.subr.bf16.mxu1 %v1122_v0  ;;  %v320_v14 = vld [vmem:[#allocation2 + $0x108] sm:$0xff]  ;;  %v362_v19 = vld [vmem:[%s1308_s8 + $0x58] sm:$0xff]  ;;  %v363_v21 = vld [vmem:[%s1308_s8 + $0x60] sm:$0xff]  ;;  %s1123_s4 = smov [#allocation7]  }
  0x61   : > { %v360_v16 = vld [vmem:[%s1308_s8 + $0x48] sm:$0xff]  ;;  %447 = vmatprep.mubr.f32.mxu0 %v288_v12  ;;  %527 = vmatprep.mubr.f32.mxu1 %v320_v14  ;;  %v824_v20 = vpack.c.bf16 %v362_v19, %v361_v18  ;;  %v365_v24 = vld [vmem:[%s1308_s8 + $0x70] sm:$0xff]  ;;  %v366_v25 = vld [vmem:[%s1308_s8 + $0x78] sm:$0xff]  ;;  %p1030_p13 = pnand %p1029_p9, %p1491_p11  ;;  %s1032_s23 = sshll.u32 %s1123_s4, 4  ;;  %s1033_s23 = int_to_ptr.vmem [resolvable:$false] %s1032_s23 }
  0x62   : > { %v821_v17 = vpack.c.bf16 %v360_v16, %v359_v15  ;;  %v364_v22 = vld [vmem:[%s1308_s8 + $0x68] sm:$0xff]  ;;  %v830_v26 = vpack.c.bf16 %v366_v25, %v365_v24  ;;  %v367_v27 = vld [vmem:[%s1308_s8 + $0x80] sm:$0xff]  ;;  %v369_v30 = vld [vmem:[%s1308_s8 + $0x90] sm:$0xff]  ;;  %s1034_s28 = scalar_lea.vmem %s1033_s23, 8192  ;;  %p1035_p1 = scmp.lt.s32.totalorder %s1419_s22, %s1033_s23 }
  0x63   : > { %813 = vmatpush1.bf16.msra.mxu0 %v812_v6  ;;  %873 = vmatpush1.bf16.msra.mxu1 %v812_v6  ;;  %v827_v23 = vpack.c.bf16 %v364_v22, %v363_v21  ;;  %v368_v28 = vld [vmem:[%s1308_s8 + $0x88] sm:$0xff]  ;;  %v370_v31 = vld [vmem:[%s1308_s8 + $0x98] sm:$0xff]  ;;  %v371_v33 = vld [vmem:[%s1308_s8 + $0xa0] sm:$0xff]  ;;  %p1031_p4 = pneg %p1030_p13  ;;  %p1036_p10 = scmp.lt.s32.totalorder %s1034_s28, %s1028_s29 }
  0x64   : > { %814 = vmatprep.subr.bf16.mxu0 %v1122_v0  ;;  %858 = vmatprep.subr.bf16.mxu1 %v1122_v0  ;;  %v833_v29 = vpack.c.bf16 %v368_v28, %v367_v27  ;;  %v836_v32 = vpack.c.bf16 %v370_v31, %v369_v30  ;;  %v372_v34 = vld [vmem:[%s1308_s8 + $0xa8] sm:$0xff]  ;;  %v373_v36 = vld [vmem:[%s1308_s8 + $0xb0] sm:$0xff]  ;;  %v374_v37 = vld [vmem:[%s1308_s8 + $0xb8] sm:$0xff] }
  0x65   : > { %v839_v35 = vpack.c.bf16 %v372_v34, %v371_v33  ;;  %v842_v38 = vpack.c.bf16 %v374_v37, %v373_v36  ;;  %v375_v39 = vld [vmem:[%s1308_s8 + $0xc0] sm:$0xff]  ;;  %v376_v40 = vld [vmem:[%s1308_s8 + $0xc8] sm:$0xff]  ;;  %v377_v42 = vld [vmem:[%s1308_s8 + $0xd0] sm:$0xff]  ;;  %p1037_p3 = por %p1036_p10, %p1035_p1 }
  0x66   : > { %v845_v41 = vpack.c.bf16 %v376_v40, %v375_v39  ;;  %v378_v43 = vld [vmem:[%s1308_s8 + $0xd8] sm:$0xff]  ;;  %v379_v45 = vld [vmem:[%s1308_s8 + $0xe0] sm:$0xff]  ;;  %v380_v46 = vld [vmem:[%s1308_s8 + $0xe8] sm:$0xff] }
  0x67   : > { %816 = vmatpush1.bf16.msra.mxu0 %v815_v9  ;;  %874 = vmatpush1.bf16.msra.mxu1 %v815_v9  ;;  %v848_v44 = vpack.c.bf16 %v378_v43, %v377_v42  ;;  %v851_v47 = vpack.c.bf16 %v380_v46, %v379_v45  ;;  %v381_v48 = vld [vmem:[%s1308_s8 + $0xf0] sm:$0xff]  ;;  %v382_v49 = vld [vmem:[%s1308_s8 + $0xf8] sm:$0xff]  ;;  %v287_v51 = vld [vmem:[#allocation2] sm:$0xff]  ;;  %p1038_p6 = pnand %p1037_p3, %p1031_p4 }
  0x68   : > { %817 = vmatprep.subr.bf16.mxu0 %v1122_v0  ;;  %859 = vmatprep.subr.bf16.mxu1 %v1122_v0  ;;  %v854_v50 = vpack.c.bf16 %v382_v49, %v381_v48  ;;  %v319_v52 = vld [vmem:[#allocation2 + $0x100] sm:$0xff]  ;;  %v290_v53 = vld [vmem:[#allocation2 + $0x18] sm:$0xff]  ;;  %v289_v55 = vld [vmem:[#allocation2 + $0x10] sm:$0xff] }
  0x69   : > { %v322_v54 = vld [vmem:[#allocation2 + $0x118] sm:$0xff]  ;;  %v321_v56 = vld [vmem:[#allocation2 + $0x110] sm:$0xff]  ;;  %v292_v57 = vld [vmem:[#allocation2 + $0x28] sm:$0xff] }
  0x6a   : > { %v324_v58 = vld [vmem:[#allocation2 + $0x128] sm:$0xff]  ;;  %v291_v59 = vld [vmem:[#allocation2 + $0x20] sm:$0xff]  ;;  %v294_v61 = vld [vmem:[#allocation2 + $0x38] sm:$0xff] }
  0x6b   : > { %819 = vmatpush1.bf16.msra.mxu0 %v818_v13  ;;  %875 = vmatpush1.bf16.msra.mxu1 %v818_v13  ;;  %v323_v60 = vld [vmem:[#allocation2 + $0x120] sm:$0xff]  ;;  %v326_v62 = vld [vmem:[#allocation2 + $0x138] sm:$0xff]  ;;  %v293_v63 = vld [vmem:[#allocation2 + $0x30] sm:$0xff] }
  0x6c   : > { %820 = vmatprep.subr.bf16.mxu0 %v1122_v0  ;;  %860 = vmatprep.subr.bf16.mxu1 %v1122_v0  ;;  %v296_v1 = vld [vmem:[#allocation2 + $0x48] sm:$0xff]  ;;  %v295_v3 = vld [vmem:[#allocation2 + $0x40] sm:$0xff]  ;;  %v298_v5 = vld [vmem:[#allocation2 + $0x58] sm:$0xff] }
  0x6d   : > { %v328_v2 = vld [vmem:[#allocation2 + $0x148] sm:$0xff]  ;;  %v327_v4 = vld [vmem:[#allocation2 + $0x140] sm:$0xff]  ;;  %v330_v6 = vld [vmem:[#allocation2 + $0x158] sm:$0xff] }
  0x6e   : > { %v297_v7 = vld [vmem:[#allocation2 + $0x50] sm:$0xff]  ;;  %v300_v9 = vld [vmem:[#allocation2 + $0x68] sm:$0xff]  ;;  %v299_v11 = vld [vmem:[#allocation2 + $0x60] sm:$0xff] }
  0x6f   : > { %822 = vmatpush1.bf16.msra.mxu0 %v821_v17  ;;  %876 = vmatpush1.bf16.msra.mxu1 %v821_v17  ;;  %v329_v8 = vld [vmem:[#allocation2 + $0x150] sm:$0xff]  ;;  %v332_v10 = vld [vmem:[#allocation2 + $0x168] sm:$0xff]  ;;  %v331_v12 = vld [vmem:[#allocation2 + $0x160] sm:$0xff] }
  0x70   : > { %823 = vmatprep.subr.bf16.mxu0 %v1122_v0  ;;  %861 = vmatprep.subr.bf16.mxu1 %v1122_v0  ;;  %v302_v13 = vld [vmem:[#allocation2 + $0x78] sm:$0xff]  ;;  %v301_v15 = vld [vmem:[#allocation2 + $0x70] sm:$0xff]  ;;  %v304_v17 = vld [vmem:[#allocation2 + $0x88] sm:$0xff] }
  0x71   : > { %v334_v14 = vld [vmem:[#allocation2 + $0x178] sm:$0xff]  ;;  %v333_v16 = vld [vmem:[#allocation2 + $0x170] sm:$0xff]  ;;  %v336_v18 = vld [vmem:[#allocation2 + $0x188] sm:$0xff] }
  0x72   : > { %v303_v19 = vld [vmem:[#allocation2 + $0x80] sm:$0xff]  ;;  %v306_v21 = vld [vmem:[#allocation2 + $0x98] sm:$0xff]  ;;  %v337_v24 = vld [vmem:[#allocation2 + $0x190] sm:$0xff] }
  0x73   : > { %825 = vmatpush1.bf16.msra.mxu0 %v824_v20  ;;  %877 = vmatpush1.bf16.msra.mxu1 %v824_v20  ;;  %v335_v20 = vld [vmem:[#allocation2 + $0x180] sm:$0xff]  ;;  %v338_v22 = vld [vmem:[#allocation2 + $0x198] sm:$0xff]  ;;  %v308_v25 = vld [vmem:[#allocation2 + $0xa8] sm:$0xff] }
  0x74   : > { %826 = vmatprep.subr.bf16.mxu0 %v1122_v0  ;;  %862 = vmatprep.subr.bf16.mxu1 %v1122_v0  ;;  %v307_v27 = vld [vmem:[#allocation2 + $0xa0] sm:$0xff]  ;;  %v342_v30 = vld [vmem:[#allocation2 + $0x1b8] sm:$0xff]  ;;  %v309_v31 = vld [vmem:[#allocation2 + $0xb0] sm:$0xff] }
  0x75   : > { %v339_v28 = vld [vmem:[#allocation2 + $0x1a0] sm:$0xff]  ;;  %v312_v33 = vld [vmem:[#allocation2 + $0xc8] sm:$0xff]  ;;  %v314_v37 = vld [vmem:[#allocation2 + $0xd8] sm:$0xff] }
  0x76   : > { %v344_v34 = vld [vmem:[#allocation2 + $0x1c8] sm:$0xff]  ;;  %v343_v36 = vld [vmem:[#allocation2 + $0x1c0] sm:$0xff]  ;;  %v313_v39 = vld [vmem:[#allocation2 + $0xd0] sm:$0xff] }
  0x77   : > { %828 = vmatpush1.bf16.msra.mxu0 %v827_v23  ;;  %878 = vmatpush1.bf16.msra.mxu1 %v827_v23  ;;  %v305_v23 = vld [vmem:[#allocation2 + $0x90] sm:$0xff]  ;;  %v348_v42 = vld [vmem:[#allocation2 + $0x1e8] sm:$0xff]  ;;  %v315_v43 = vld [vmem:[#allocation2 + $0xe0] sm:$0xff] }
  0x78   : > { %829 = vmatprep.subr.bf16.mxu0 %v1122_v0  ;;  %863 = vmatprep.subr.bf16.mxu1 %v1122_v0  ;;  %v345_v40 = vld [vmem:[#allocation2 + $0x1d0] sm:$0xff]  ;;  %v318_v45 = vld [vmem:[#allocation2 + $0xf8] sm:$0xff] }
  0x79   : > { %v350_v46 = vld [vmem:[#allocation2 + $0x1f8] sm:$0xff]  ;;  %v349_v48 = vld [vmem:[#allocation2 + $0x1f0] sm:$0xff] }
  0x7b   : > { %831 = vmatpush1.bf16.msra.mxu0 %v830_v26  ;;  %879 = vmatpush1.bf16.msra.mxu1 %v830_v26  ;;  %v340_v26 = vld [vmem:[#allocation2 + $0x1a8] sm:$0xff] }
  0x7c   : > { %832 = vmatprep.subr.bf16.mxu0 %v1122_v0  ;;  %864 = vmatprep.subr.bf16.mxu1 %v1122_v0 }
  0x7f   : > { %834 = vmatpush1.bf16.msra.mxu0 %v833_v29  ;;  %880 = vmatpush1.bf16.msra.mxu1 %v833_v29  ;;  %v310_v29 = vld [vmem:[#allocation2 + $0xb8] sm:$0xff] }
  0x80   : > { %835 = vmatprep.subr.bf16.mxu0 %v1122_v0  ;;  %865 = vmatprep.subr.bf16.mxu1 %v1122_v0 }
  0x83   : > { %837 = vmatpush1.bf16.msra.mxu0 %v836_v32  ;;  %881 = vmatpush1.bf16.msra.mxu1 %v836_v32  ;;  %v341_v32 = vld [vmem:[#allocation2 + $0x1b0] sm:$0xff] }
  0x84   : > { %838 = vmatprep.subr.bf16.mxu0 %v1122_v0  ;;  %866 = vmatprep.subr.bf16.mxu1 %v1122_v0 }
  0x87   : > { %840 = vmatpush1.bf16.msra.mxu0 %v839_v35  ;;  %882 = vmatpush1.bf16.msra.mxu1 %v839_v35  ;;  %v311_v35 = vld [vmem:[#allocation2 + $0xc0] sm:$0xff] }
  0x88   : > { %841 = vmatprep.subr.bf16.mxu0 %v1122_v0  ;;  %867 = vmatprep.subr.bf16.mxu1 %v1122_v0 }
  0x8b   : > { %843 = vmatpush1.bf16.msra.mxu0 %v842_v38  ;;  %883 = vmatpush1.bf16.msra.mxu1 %v842_v38  ;;  %v346_v38 = vld [vmem:[#allocation2 + $0x1d8] sm:$0xff] }
  0x8c   : > { %844 = vmatprep.subr.bf16.mxu0 %v1122_v0  ;;  %868 = vmatprep.subr.bf16.mxu1 %v1122_v0 }
  0x8f   : > { %846 = vmatpush1.bf16.msra.mxu0 %v845_v41  ;;  %884 = vmatpush1.bf16.msra.mxu1 %v845_v41  ;;  %v316_v41 = vld [vmem:[#allocation2 + $0xe8] sm:$0xff] }
  0x90   : > { %847 = vmatprep.subr.bf16.mxu0 %v1122_v0  ;;  %869 = vmatprep.subr.bf16.mxu1 %v1122_v0 }
  0x93   : > { %849 = vmatpush1.bf16.msra.mxu0 %v848_v44  ;;  %885 = vmatpush1.bf16.msra.mxu1 %v848_v44  ;;  %v347_v44 = vld [vmem:[#allocation2 + $0x1e0] sm:$0xff] }
  0x94   : > { %850 = vmatprep.subr.bf16.mxu0 %v1122_v0  ;;  %870 = vmatprep.subr.bf16.mxu1 %v1122_v0 }
  0x97   : > { %852 = vmatpush1.bf16.msra.mxu0 %v851_v47  ;;  %886 = vmatpush1.bf16.msra.mxu1 %v851_v47  ;;  %v317_v47 = vld [vmem:[#allocation2 + $0xf0] sm:$0xff] }
  0x98   : > { %853 = vmatprep.subr.bf16.mxu0 %v1122_v0  ;;  %871 = vmatprep.subr.bf16.mxu1 %v1122_v0  ;;  %v325_v0 = vld [vmem:[#allocation2 + $0x130] sm:$0xff] }
  0x9b   : > { %855 = vmatpush1.bf16.msra.mxu0 %v854_v50  ;;  %887 = vmatpush1.bf16.msra.mxu1 %v854_v50 }
  0x9e   : > { %448 = vmatmul.mubr.f32.vlgmr.msra.gmra.mrb[0].mxu0 %v287_v51  ;;  %528 = vmatmul.mubr.f32.vlgmr.msra.gmra.mrb[0].mxu1 %v319_v52 }
  0x9f   : > { %452 = vmatprep.mubr.f32.mxu0 %v290_v53  ;;  %532 = vmatprep.mubr.f32.mxu1 %v322_v54 }
  0xa2   : > { %453 = vmatmul.mubr.f32.gmra.mrb[2].mxu0 %v289_v55  ;;  %533 = vmatmul.mubr.f32.gmra.mrb[2].mxu1 %v321_v56 }
  0xa3   : > { %457 = vmatprep.mubr.f32.mxu0 %v292_v57  ;;  %537 = vmatprep.mubr.f32.mxu1 %v324_v58 }
  0xa6   : > { %458 = vmatmul.mubr.f32.gmra.mrb[4].mxu0 %v291_v59  ;;  %538 = vmatmul.mubr.f32.gmra.mrb[4].mxu1 %v323_v60 }
  0xa7   : > { %462 = vmatprep.mubr.f32.mxu0 %v294_v61  ;;  %542 = vmatprep.mubr.f32.mxu1 %v326_v62 }
  0xaa   : > { %463 = vmatmul.mubr.f32.gmra.mrb[6].mxu0 %v293_v63  ;;  %543 = vmatmul.mubr.f32.gmra.mrb[6].mxu1 %v325_v0 }
  0xab   : > { %467 = vmatprep.mubr.f32.mxu0 %v296_v1  ;;  %547 = vmatprep.mubr.f32.mxu1 %v328_v2 }
  0xae   : > { %468 = vmatmul.mubr.f32.gmra.mrb[8].mxu0 %v295_v3  ;;  %548 = vmatmul.mubr.f32.gmra.mrb[8].mxu1 %v327_v4 }
  0xaf   : > { %472 = vmatprep.mubr.f32.mxu0 %v298_v5  ;;  %552 = vmatprep.mubr.f32.mxu1 %v330_v6 }
  0xb2   : > { %473 = vmatmul.mubr.f32.gmra.mrb[10].mxu0 %v297_v7  ;;  %553 = vmatmul.mubr.f32.gmra.mrb[10].mxu1 %v329_v8 }
  0xb3   : > { %477 = vmatprep.mubr.f32.mxu0 %v300_v9  ;;  %557 = vmatprep.mubr.f32.mxu1 %v332_v10 }
  0xb6   : > { %478 = vmatmul.mubr.f32.gmra.mrb[12].mxu0 %v299_v11  ;;  %558 = vmatmul.mubr.f32.gmra.mrb[12].mxu1 %v331_v12 }
  0xb7   : > { %482 = vmatprep.mubr.f32.mxu0 %v302_v13  ;;  %562 = vmatprep.mubr.f32.mxu1 %v334_v14 }
  0xba   : > { %483 = vmatmul.mubr.f32.gmra.mrb[14].mxu0 %v301_v15  ;;  %563 = vmatmul.mubr.f32.gmra.mrb[14].mxu1 %v333_v16 }
  0xbb   : > { %487 = vmatprep.mubr.f32.mxu0 %v304_v17  ;;  %567 = vmatprep.mubr.f32.mxu1 %v336_v18 }
  0xbe   : > { %488 = vmatmul.mubr.f32.gmra.mrb[16].mxu0 %v303_v19  ;;  %568 = vmatmul.mubr.f32.gmra.mrb[16].mxu1 %v335_v20 }
  0xbf   : > { %492 = vmatprep.mubr.f32.mxu0 %v306_v21  ;;  %572 = vmatprep.mubr.f32.mxu1 %v338_v22 }
  0xc2   : > { %493 = vmatmul.mubr.f32.gmra.mrb[18].mxu0 %v305_v23  ;;  %573 = vmatmul.mubr.f32.gmra.mrb[18].mxu1 %v337_v24 }
  0xc3   : > { %497 = vmatprep.mubr.f32.mxu0 %v308_v25  ;;  %577 = vmatprep.mubr.f32.mxu1 %v340_v26 }
  0xc6   : > { %498 = vmatmul.mubr.f32.gmra.mrb[20].mxu0 %v307_v27  ;;  %578 = vmatmul.mubr.f32.gmra.mrb[20].mxu1 %v339_v28 }
  0xc7   : > { %502 = vmatprep.mubr.f32.mxu0 %v310_v29  ;;  %582 = vmatprep.mubr.f32.mxu1 %v342_v30 }
  0xca   : > { %503 = vmatmul.mubr.f32.gmra.mrb[22].mxu0 %v309_v31  ;;  %583 = vmatmul.mubr.f32.gmra.mrb[22].mxu1 %v341_v32 }
  0xcb   : > { %507 = vmatprep.mubr.f32.mxu0 %v312_v33  ;;  %587 = vmatprep.mubr.f32.mxu1 %v344_v34 }
  0xce   : > { %508 = vmatmul.mubr.f32.gmra.mrb[24].mxu0 %v311_v35  ;;  %588 = vmatmul.mubr.f32.gmra.mrb[24].mxu1 %v343_v36 }
  0xcf   : > { %512 = vmatprep.mubr.f32.mxu0 %v314_v37  ;;  %592 = vmatprep.mubr.f32.mxu1 %v346_v38 }
  0xd2   : > { %513 = vmatmul.mubr.f32.gmra.mrb[26].mxu0 %v313_v39  ;;  %593 = vmatmul.mubr.f32.gmra.mrb[26].mxu1 %v345_v40 }
  0xd3   : > { %517 = vmatprep.mubr.f32.mxu0 %v316_v41  ;;  %597 = vmatprep.mubr.f32.mxu1 %v348_v42 }
  0xd6   : > { %518 = vmatmul.mubr.f32.gmra.mrb[28].mxu0 %v315_v43  ;;  %598 = vmatmul.mubr.f32.gmra.mrb[28].mxu1 %v347_v44 }
  0xd7   : > { %522 = vmatprep.mubr.f32.mxu0 %v318_v45  ;;  %602 = vmatprep.mubr.f32.mxu1 %v350_v46 }
  0xda   : > { %523 = vmatmul.mubr.f32.gmra.mrb[30].mxu0 %v317_v47  ;;  %603 = vmatmul.mubr.f32.gmra.mrb[30].mxu1 %v349_v48 }
 0x171   : > { %v449_v49 = vpop.f32.mrb[0].mxu0  ;;  %v529_v50 = vpop.f32.mrb[0].mxu1 }
 0x172   : > { %v451_v51 = vpop.f32.mrb[1].mxu0  ;;  %v531_v52 = vpop.f32.mrb[1].mxu1  ;;  %640 = vst [vmem:[%s1380_s17] sm:$0xff] %v449_v49  ;;  %656 = vst [vmem:[%s1380_s17 + $0x80] sm:$0xff] %v529_v50 }
 0x175   : > { %v454_v53 = vpop.f32.mrb[2].mxu0  ;;  %v534_v54 = vpop.f32.mrb[2].mxu1 }
 0x176   : > { %v456_v55 = vpop.f32.mrb[3].mxu0  ;;  %v536_v56 = vpop.f32.mrb[3].mxu1  ;;  %641 = vst [vmem:[%s1380_s17 + $0x8] sm:$0xff] %v454_v53  ;;  %657 = vst [vmem:[%s1380_s17 + $0x88] sm:$0xff] %v534_v54 }
 0x179   : > { %v459_v57 = vpop.f32.mrb[4].mxu0  ;;  %v539_v58 = vpop.f32.mrb[4].mxu1 }
 0x17a   : > { %v461_v59 = vpop.f32.mrb[5].mxu0  ;;  %v541_v60 = vpop.f32.mrb[5].mxu1  ;;  %642 = vst [vmem:[%s1380_s17 + $0x10] sm:$0xff] %v459_v57  ;;  %658 = vst [vmem:[%s1380_s17 + $0x90] sm:$0xff] %v539_v58 }
 0x17d   : > { %v464_v61 = vpop.f32.mrb[6].mxu0  ;;  %v544_v62 = vpop.f32.mrb[6].mxu1 }
 0x17e   : > { %v466_v63 = vpop.f32.mrb[7].mxu0  ;;  %v546_v0 = vpop.f32.mrb[7].mxu1  ;;  %643 = vst [vmem:[%s1380_s17 + $0x18] sm:$0xff] %v464_v61  ;;  %659 = vst [vmem:[%s1380_s17 + $0x98] sm:$0xff] %v544_v62 }
 0x181   : > { %v469_v1 = vpop.f32.mrb[8].mxu0  ;;  %v549_v2 = vpop.f32.mrb[8].mxu1 }
 0x182   : > { %v471_v3 = vpop.f32.mrb[9].mxu0  ;;  %v551_v4 = vpop.f32.mrb[9].mxu1  ;;  %644 = vst [vmem:[%s1380_s17 + $0x20] sm:$0xff] %v469_v1  ;;  %660 = vst [vmem:[%s1380_s17 + $0xa0] sm:$0xff] %v549_v2 }
 0x185   : > { %v474_v5 = vpop.f32.mrb[10].mxu0  ;;  %v554_v6 = vpop.f32.mrb[10].mxu1 }
 0x186   : > { %v476_v7 = vpop.f32.mrb[11].mxu0  ;;  %v556_v8 = vpop.f32.mrb[11].mxu1  ;;  %645 = vst [vmem:[%s1380_s17 + $0x28] sm:$0xff] %v474_v5  ;;  %661 = vst [vmem:[%s1380_s17 + $0xa8] sm:$0xff] %v554_v6 }
 0x189   : > { %v479_v9 = vpop.f32.mrb[12].mxu0  ;;  %v559_v10 = vpop.f32.mrb[12].mxu1 }
 0x18a   : > { %v481_v11 = vpop.f32.mrb[13].mxu0  ;;  %v561_v12 = vpop.f32.mrb[13].mxu1  ;;  %646 = vst [vmem:[%s1380_s17 + $0x30] sm:$0xff] %v479_v9  ;;  %662 = vst [vmem:[%s1380_s17 + $0xb0] sm:$0xff] %v559_v10 }
 0x18d   : > { %v484_v13 = vpop.f32.mrb[14].mxu0  ;;  %v564_v14 = vpop.f32.mrb[14].mxu1 }
 0x18e   : > { %v486_v15 = vpop.f32.mrb[15].mxu0  ;;  %v566_v16 = vpop.f32.mrb[15].mxu1  ;;  %647 = vst [vmem:[%s1380_s17 + $0x38] sm:$0xff] %v484_v13  ;;  %663 = vst [vmem:[%s1380_s17 + $0xb8] sm:$0xff] %v564_v14 }
 0x191   : > { %v489_v17 = vpop.f32.mrb[16].mxu0  ;;  %v569_v18 = vpop.f32.mrb[16].mxu1 }
 0x192   : > { %v491_v19 = vpop.f32.mrb[17].mxu0  ;;  %v571_v20 = vpop.f32.mrb[17].mxu1  ;;  %648 = vst [vmem:[%s1380_s17 + $0x40] sm:$0xff] %v489_v17  ;;  %664 = vst [vmem:[%s1380_s17 + $0xc0] sm:$0xff] %v569_v18 }
 0x195   : > { %v494_v21 = vpop.f32.mrb[18].mxu0  ;;  %v574_v22 = vpop.f32.mrb[18].mxu1 }
 0x196   : > { %v496_v23 = vpop.f32.mrb[19].mxu0  ;;  %v576_v24 = vpop.f32.mrb[19].mxu1  ;;  %649 = vst [vmem:[%s1380_s17 + $0x48] sm:$0xff] %v494_v21  ;;  %665 = vst [vmem:[%s1380_s17 + $0xc8] sm:$0xff] %v574_v22 }
 0x199   : > { %v499_v25 = vpop.f32.mrb[20].mxu0  ;;  %v579_v26 = vpop.f32.mrb[20].mxu1 }
 0x19a   : > { %v501_v27 = vpop.f32.mrb[21].mxu0  ;;  %v581_v28 = vpop.f32.mrb[21].mxu1  ;;  %650 = vst [vmem:[%s1380_s17 + $0x50] sm:$0xff] %v499_v25  ;;  %666 = vst [vmem:[%s1380_s17 + $0xd0] sm:$0xff] %v579_v26 }
 0x19d   : > { %v504_v29 = vpop.f32.mrb[22].mxu0  ;;  %v584_v30 = vpop.f32.mrb[22].mxu1 }
 0x19e   : > { %v506_v31 = vpop.f32.mrb[23].mxu0  ;;  %v586_v32 = vpop.f32.mrb[23].mxu1  ;;  %651 = vst [vmem:[%s1380_s17 + $0x58] sm:$0xff] %v504_v29  ;;  %667 = vst [vmem:[%s1380_s17 + $0xd8] sm:$0xff] %v584_v30 }
 0x1a1   : > { %v509_v33 = vpop.f32.mrb[24].mxu0  ;;  %v589_v34 = vpop.f32.mrb[24].mxu1 }
 0x1a2   : > { %v511_v35 = vpop.f32.mrb[25].mxu0  ;;  %v591_v36 = vpop.f32.mrb[25].mxu1  ;;  %652 = vst [vmem:[%s1380_s17 + $0x60] sm:$0xff] %v509_v33  ;;  %668 = vst [vmem:[%s1380_s17 + $0xe0] sm:$0xff] %v589_v34 }
 0x1a5   : > { %v514_v37 = vpop.f32.mrb[26].mxu0  ;;  %v594_v38 = vpop.f32.mrb[26].mxu1 }
 0x1a6   : > { %v516_v39 = vpop.f32.mrb[27].mxu0  ;;  %v596_v40 = vpop.f32.mrb[27].mxu1  ;;  %653 = vst [vmem:[%s1380_s17 + $0x68] sm:$0xff] %v514_v37  ;;  %669 = vst [vmem:[%s1380_s17 + $0xe8] sm:$0xff] %v594_v38 }
 0x1a9   : > { %v519_v41 = vpop.f32.mrb[28].mxu0  ;;  %v599_v42 = vpop.f32.mrb[28].mxu1 }
 0x1aa   : > { %v521_v43 = vpop.f32.mrb[29].mxu0  ;;  %v601_v44 = vpop.f32.mrb[29].mxu1  ;;  %654 = vst [vmem:[%s1380_s17 + $0x70] sm:$0xff] %v519_v41  ;;  %670 = vst [vmem:[%s1380_s17 + $0xf0] sm:$0xff] %v599_v42 }
 0x1ad   : > { %v524_v45 = vpop.f32.mrb[30].mxu0  ;;  %v604_v46 = vpop.f32.mrb[30].mxu1 }
 0x1ae   : > { %v526_v47 = vpop.f32.mrb[31].mxu0  ;;  %v606_v48 = vpop.f32.mrb[31].mxu1  ;;  %655 = vst [vmem:[%s1380_s17 + $0x78] sm:$0xff] %v524_v45  ;;  %671 = vst [vmem:[%s1380_s17 + $0xf8] sm:$0xff] %v604_v46 }
 0x1af   : > { %1041 = shalt.err (!%p1038_p6)
}
 0x1b0   : > { %s1042_s25 = scalar_lea.hbm %s1417_s15, 4096  ;;  %s1046_s18 = scalar_lea.hbm %s1472_s2, 8192 }
 0x1b1   : > { %p1043_p0 = scmp.ne.s32.totalorder %s1417_s15, %s1042_s25  ;;  %p1047_p12 = scmp.lt.u32.totalorder %s1417_s15, %s1472_s2 }
 0x1b2   : > { %p1048_p5 = scmp.lt.u32.totalorder %s1046_s18, %s1042_s25  ;;  %p1050_p9 = scmp.lt.u32.totalorder %s1042_s25, %s1417_s15 }
 0x1b3   : > { %p1044_p2 = pnand %p1043_p0, %p1491_p11 }
 0x1b4   : > { %p1049_p8 = por %p1048_p5, %p1047_p12 }
 0x1b5   : > { %p1045_p7 = pneg %p1044_p2 }
 0x1b6   : > { %p1051_p13 = por %p1050_p9, %p1049_p8 }
 0x1b8   : > { %p1052_p4 = pnand %p1051_p13, %p1045_p7 }
 0x1ba   : > { %1055 = shalt.err (!%p1052_p4)
}
 0x1bb   : > { %s1124_s8 = smov 128   ;;  %s1125_s17 = smov 256  }
 0x1bc   : > { %s1126_s19 = smov 8  }
 0x1bd   : > { %894 = dma.vmem_to_hbm [thread:$0]  (%p1491_p11), %s1419_s22, 4096, %s1417_s15, %s673_s12, %s1124_s8, %s1125_s17, %s1126_s19  }
 0x1be PF: > { %s703_s5 = sand.u32 1, %s1094_s9   ;;  %p1492_p1 = scmp.ne.s32.totalorder %s1483_s21, 0 }
 0x1bf   : > { %p1493_p10 = scmp.ge.s32.totalorder %s1114_s14, 2  ;;  %s704_s6 = scalar_lea.sflag [#allocation4], %s703_s5 }
 0x1c1   : > { %p905_p3 = pnand %p1493_p10, %p1492_p1 }
 0x1c3   : > { %1089 = dma.done.wait (!%p905_p3), %s704_s6, 4096  }
 0x1c4   : > { %1091 = vsyncadd (!%p905_p3), %s704_s6, 4294963200  ;;  %s19_s14 = sadd.s32 1, %s1114_s14   ;;  %s1494_s9 = smov %s1098_s10 }
 0x1c5   : > { %p16_p6 = scmp.ge.s32.totalorder %s19_s14, 4   ;;  %s1495_s10 = smov %s1102_s11 }
 0x1c6   : > { %s1496_s11 = smov %s1262_s7  ;;  %s1497_s12 = smov %s1110_s13 }
 0x1c7   : > { %s1498_s13 = smov %s1500_s27  ;;  %18 = sbr.rel (!%p16_p6) target bundleno = 7 (0x7), region = 83 }
 0x1ce   :  { %709 = vsyncpa [#allocation3], 1 }
 0x1cf   :  { %711 = vsyncpa [#allocation3 + $0x1], 1 }
 0x1d0   :  { %712 = vsyncpa [#allocation6], 1 }
 0x1d1   :  { %714 = vsyncpa [#allocation6 + $0x1], 1 }
 0x1d2   :  { %715 = vsyncpa [#allocation4], 1 }
 0x1d3   :  { %717 = vsyncpa [#allocation4 + $0x1], 1 }

</bundles_post_ra>
